<compile_context>
chip_gen: v5e
topology: v5e:2x2
jax: 0.10.0
libtpu: 0.0.40
codegen_flags: <defaults>
</compile_context>

<pallas_src>
import functools

import jax
import jax.numpy as jnp
from jax import lax
from jax.experimental import pallas as pl
from jax.experimental.pallas import tpu as pltpu


def _lstm_chunk_kernel(x_ref, w_ref, u_ref, b_ref, wp_ref, bp_ref,
                       y_ref, c_out_ref, h_out_ref,
                       xw_sc, hall_sc, c_sc, h_sc,
                       *, bblk, chunk, hidden, seq_len, mask_tail):
    """One grid step == one (batch block, time chunk) tile.

    Refs:
      x_ref   : (chunk*bblk, I)   time-major rows of this batch block / chunk
      w_ref   : (I, 4H)           stacked [W_i | W_f | W_o | W_c]
      u_ref   : (H, 4H)           stacked [U_i | U_f | U_o | U_c]
      b_ref   : (1, 4H)           summed per-gate biases
      wp_ref  : (H, Op)           projection weight (lane-padded to Op>=128)
      bp_ref  : (1, Op)           projection bias   (lane-padded)
      y_ref   : (chunk*bblk, Op)  outputs for this chunk (lane-dense store)
      c_out_ref, h_out_ref : (bblk, H)  final state, written at the last chunk
      xw_sc   : (chunk*bblk, 4H)  f32 staging for the hoisted input matmul
      hall_sc : (chunk*bblk, H)   f32 per-chunk h buffer for the batched proj
      c_sc, h_sc : (bblk, H)      f32 state carried across chunks
    """
    k = pl.program_id(1)                       # time-chunk index (sequential)

    @pl.when(k == 0)
    def _():
        c_sc[...] = jnp.zeros_like(c_sc)
        h_sc[...] = jnp.zeros_like(h_sc)

    u = u_ref[...]

    # ---- Phase 1: hoisted input matmul for the whole chunk (one MXU op),
    #      staged into VMEM scratch to bound vreg pressure. --------------------
    xw_sc[...] = jnp.dot(x_ref[...], w_ref[...],
                         preferred_element_type=jnp.float32) + b_ref[...]

    c0 = c_sc[...]
    h0 = h_sc[...]
    chunk_base = k * chunk

    # ---- Phase 2: sequential recurrence; only h @ U on the critical path. ----
    def step(t, carry):
        c, h = carry
        row0 = pl.multiple_of(t * bblk, 8)              # sublane-aligned slice
        gates = xw_sc[pl.ds(row0, bblk), :] + jnp.dot(
            h, u, preferred_element_type=jnp.float32)
        # Fused nonlinearities: one sigmoid over the i|f|o block, one tanh.
        sig = jax.nn.sigmoid(gates[:, :3 * hidden])
        i_g = sig[:, 0 * hidden:1 * hidden]
        f_g = sig[:, 1 * hidden:2 * hidden]
        o_g = sig[:, 2 * hidden:3 * hidden]
        g = jnp.tanh(gates[:, 3 * hidden:])

        c_new = f_g * c + i_g * g
        h_new = o_g * jnp.tanh(c_new)

        if mask_tail:
            # Padded (beyond-S) timesteps must not advance the state.
            valid = (chunk_base + t) < seq_len
            c_new = jnp.where(valid, c_new, c)
            h_new = jnp.where(valid, h_new, h)

        hall_sc[pl.ds(row0, bblk), :] = h_new
        return c_new, h_new

    c, h = lax.fori_loop(0, chunk, step, (c0, h0), unroll=True)

    c_sc[...] = c
    h_sc[...] = h

    # ---- Phase 3: batched, lane-dense output projection for the chunk. -------
    y_ref[...] = (jnp.dot(hall_sc[...], wp_ref[...],
                          preferred_element_type=jnp.float32)
                  + bp_ref[...]).astype(y_ref.dtype)

    @pl.when(k == pl.num_programs(1) - 1)
    def _():
        c_out_ref[...] = c.astype(c_out_ref.dtype)
        h_out_ref[...] = h.astype(h_out_ref.dtype)


def _round_up(n, m):
    return -(-n // m) * m


@jax.jit
def lstm_simple_forward(x, params):
    """x: (B, S, I) float32. Returns (outputs (B, S, O), (c (B, H), h (B, H)))."""
    B, S, I = x.shape
    W, U, b, Wp, bp = (params["W"], params["U"], params["b"],
                       params["Wp"], params["bp"])
    H = U.shape[0]
    O = Wp.shape[1]

    BBLK = 8                                   # sublane-aligned batch block
    Bp = _round_up(max(B, 1), BBLK)
    n_bb = Bp // BBLK

    T = min(S, 8)                              # fixed time chunk (amortizes
    Sp = _round_up(S, T)                       # per-grid-step overhead); pad S
    n_chunks = Sp // T                         # up instead of shrinking T.
    mask_tail = Sp != S

    Op = _round_up(max(O, 1), 128)             # lane-dense output store

    # Layout: per batch block, time-major chunks, flattened to rows.
    # Padded rows/timesteps are zero; rows are fully independent (row-wise ops
    # only) and padded state updates are masked in the kernel.
    x_p = jnp.pad(x, ((0, Bp - B), (0, Sp - S), (0, 0)))              # (Bp,Sp,I)
    x_tm = jnp.transpose(x_p.reshape(n_bb, BBLK, Sp, I), (0, 2, 1, 3))
    x_flat = x_tm.reshape(n_bb * Sp * BBLK, I)

    b2 = b.reshape(1, 4 * H)
    Wp_p = jnp.pad(Wp, ((0, 0), (0, Op - O)))
    bp_p = jnp.pad(bp, ((0, Op - O),)).reshape(1, Op)

    # TODO(synk): for scaled-up H, cast W/U/Wp_p to bf16 here (keep f32 gate
    # math + preferred_element_type=f32) and set
    # compiler_params=pltpu.CompilerParams(vmem_limit_bytes=...) explicitly.

    kernel = functools.partial(_lstm_chunk_kernel, bblk=BBLK, chunk=T,
                               hidden=H, seq_len=S, mask_tail=mask_tail)

    # Constant (grid-invariant) weights: single-buffer to halve their VMEM
    # footprint (Pallas double-buffers every input by default).
    const = pl.Buffered(1)

    grid_spec = pltpu.PrefetchScalarGridSpec(
        num_scalar_prefetch=0,
        grid=(n_bb, n_chunks),                 # (batch blocks, time chunks)
        in_specs=[
            pl.BlockSpec((T * BBLK, I), lambda bb, k: (bb * n_chunks + k, 0)),
            pl.BlockSpec((I, 4 * H), lambda bb, k: (0, 0), pipeline_mode=const),
            pl.BlockSpec((H, 4 * H), lambda bb, k: (0, 0), pipeline_mode=const),
            pl.BlockSpec((1, 4 * H), lambda bb, k: (0, 0), pipeline_mode=const),
            pl.BlockSpec((H, Op), lambda bb, k: (0, 0), pipeline_mode=const),
            pl.BlockSpec((1, Op), lambda bb, k: (0, 0), pipeline_mode=const),
        ],
        out_specs=[
            pl.BlockSpec((T * BBLK, Op), lambda bb, k: (bb * n_chunks + k, 0)),
            pl.BlockSpec((BBLK, H), lambda bb, k: (bb, 0)),
            pl.BlockSpec((BBLK, H), lambda bb, k: (bb, 0)),
        ],
        scratch_shapes=[
            pltpu.VMEM((T * BBLK, 4 * H), jnp.float32),   # xw staging
            pltpu.VMEM((T * BBLK, H), jnp.float32),       # per-chunk h buffer
            pltpu.VMEM((BBLK, H), jnp.float32),           # c carry
            pltpu.VMEM((BBLK, H), jnp.float32),           # h carry
        ],
    )

    cost = pl.CostEstimate(
        flops=2 * Sp * Bp * (I * 4 * H + H * 4 * H + H * Op),
        transcendentals=5 * Sp * Bp * H,
        bytes_accessed=4 * (Sp * Bp * I + I * 4 * H + H * 4 * H + 4 * H
                            + H * Op + Op + Sp * Bp * Op + 2 * Bp * H),
    )

    y_flat, c_fin, h_fin = pl.pallas_call(
        kernel,
        out_shape=(
            jax.ShapeDtypeStruct((n_bb * Sp * BBLK, Op), jnp.float32),
            jax.ShapeDtypeStruct((Bp, H), jnp.float32),
            jax.ShapeDtypeStruct((Bp, H), jnp.float32),
        ),
        grid_spec=grid_spec,
        compiler_params=pltpu.CompilerParams(
            # batch blocks independent (megacore on v7x); time is a recurrence.
            dimension_semantics=("parallel", "arbitrary")),
        cost_estimate=cost,
    )(x_flat, W, U, b2, Wp_p, bp_p)

    y = y_flat.reshape(n_bb, Sp, BBLK, Op)
    y = jnp.transpose(y, (0, 2, 1, 3)).reshape(Bp, Sp, Op)
    outputs = y[:B, :S, :O]
    return outputs, (c_fin[:B], h_fin[:B])


def init_params(key, input_dim, hidden_dim, output_dim):
    """Synthetic parameters matching the PyTorch module shapes.

    Each gate's input/recurrent weights are stored transposed ((in, out)) and
    stacked along the output axis in order [i, f, o, c]; the two per-gate
    biases (W_* bias and U_* bias) are summed into one.
    """
    ks = jax.random.split(key, 5)
    scale = 0.1
    W = scale * jax.random.normal(ks[0], (input_dim, 4 * hidden_dim), jnp.float32)
    U = scale * jax.random.normal(ks[1], (hidden_dim, 4 * hidden_dim), jnp.float32)
    b = scale * jax.random.normal(ks[2], (4 * hidden_dim,), jnp.float32)
    Wp = scale * jax.random.normal(ks[3], (hidden_dim, output_dim), jnp.float32)
    bp = scale * jax.random.normal(ks[4], (output_dim,), jnp.float32)
    return {"W": W, "U": U, "b": b, "Wp": Wp, "bp": bp}


def reference_forward(x, params):
    """Pure-JAX reference (mirrors the PyTorch forward) for validation."""
    B, S, I = x.shape
    W, U, b, Wp, bp = (params["W"], params["U"], params["b"],
                       params["Wp"], params["bp"])
    H = U.shape[0]
    c = jnp.zeros((B, H), jnp.float32)
    h = jnp.zeros((B, H), jnp.float32)
    ys = []
    for t in range(S):
        x_t = x[:, t, :]
        gates = x_t @ W + h @ U + b
        i_g = jax.nn.sigmoid(gates[:, 0 * H:1 * H])
        f_g = jax.nn.sigmoid(gates[:, 1 * H:2 * H])
        o_g = jax.nn.sigmoid(gates[:, 2 * H:3 * H])
        g = jnp.tanh(gates[:, 3 * H:4 * H])
        c = f_g * c + i_g * g
        h = o_g * jnp.tanh(c)
        ys.append(h @ Wp + bp)
    return jnp.stack(ys, axis=1), (c, h)


def _check(x, params, batch, seq, hidden_dim, output_dim):
    outputs, (c_fin, h_fin) = lstm_simple_forward(x, params)
    jax.block_until_ready((outputs, c_fin, h_fin))
    ref_out, (ref_c, ref_h) = reference_forward(x, params)
    assert outputs.shape == (batch, seq, output_dim)
    assert c_fin.shape == (batch, hidden_dim) and h_fin.shape == (batch, hidden_dim)
    assert jnp.allclose(outputs, ref_out, atol=1e-5, rtol=1e-5)
    assert jnp.allclose(c_fin, ref_c, atol=1e-5, rtol=1e-5)
    assert jnp.allclose(h_fin, ref_h, atol=1e-5, rtol=1e-5)


if __name__ == "__main__":
    batch, seq, input_dim, hidden_dim, output_dim = 2, 8, 16, 32, 8

    key = jax.random.PRNGKey(0)
    k_x, k_p, k_x2 = jax.random.split(key, 3)
    params = init_params(k_p, input_dim, hidden_dim, output_dim)

    # Main check: nominal shapes.
    x = jax.random.normal(k_x, (batch, seq, input_dim), jnp.float32)
    _check(x, params, batch, seq, hidden_dim, output_dim)

    # Extra check: awkward batch/sequence (exercises batch padding, multi-chunk
    # state carry, and masked padded timesteps).
    b2, s2 = 3, 11
    x2 = jax.random.normal(k_x2, (b2, s2, input_dim), jnp.float32)
    _check(x2, params, b2, s2, hidden_dim, output_dim)

    print("KERNEL_OK")
</pallas_src>

<mosaic_0001>
module attributes {stable_mosaic.version = 11 : i64} {
  func.func @_lstm_chunk_kernel(%arg0: i32, %arg1: i32, %arg2: memref<64x16xf32, #tpu.memory_space<vmem>>, %arg3: memref<16x128xf32, #tpu.memory_space<vmem>>, %arg4: memref<32x128xf32, #tpu.memory_space<vmem>>, %arg5: memref<1x128xf32, #tpu.memory_space<vmem>>, %arg6: memref<32x128xf32, #tpu.memory_space<vmem>>, %arg7: memref<1x128xf32, #tpu.memory_space<vmem>>, %arg8: memref<64x128xf32, #tpu.memory_space<vmem>>, %arg9: memref<8x32xf32, #tpu.memory_space<vmem>>, %arg10: memref<8x32xf32, #tpu.memory_space<vmem>>, %arg11: memref<64x128xf32, #tpu.memory_space<vmem>>, %arg12: memref<64x32xf32, #tpu.memory_space<vmem>>, %arg13: memref<8x32xf32, #tpu.memory_space<vmem>>, %arg14: memref<8x32xf32, #tpu.memory_space<vmem>>) attributes {dimension_semantics = [#tpu.dimension_semantics<parallel>, #tpu.dimension_semantics<arbitrary>], iteration_bounds = array<i64: 1, 1>, scalar_prefetch = 0 : i64, scratch_operands = 4 : i64, tpu.core_type = #tpu.core_type<tc>, window_params = [{transform_indices = @transform_0, window_bounds = array<i64: 64, 16>}, {pipeline_mode = #tpu.pipeline_mode<synchronous>, transform_indices = @transform_1, window_bounds = array<i64: 16, 128>}, {pipeline_mode = #tpu.pipeline_mode<synchronous>, transform_indices = @transform_2, window_bounds = array<i64: 32, 128>}, {pipeline_mode = #tpu.pipeline_mode<synchronous>, transform_indices = @transform_3, window_bounds = array<i64: 1, 128>}, {pipeline_mode = #tpu.pipeline_mode<synchronous>, transform_indices = @transform_4, window_bounds = array<i64: 32, 128>}, {pipeline_mode = #tpu.pipeline_mode<synchronous>, transform_indices = @transform_5, window_bounds = array<i64: 1, 128>}, {transform_indices = @transform_6, window_bounds = array<i64: 64, 128>}, {transform_indices = @transform_7, window_bounds = array<i64: 8, 32>}, {transform_indices = @transform_8, window_bounds = array<i64: 8, 32>}]} {
    %c0_i32 = arith.constant 0 : i32
    %0 = arith.cmpi eq, %arg1, %c0_i32 : i32
    %1 = arith.extui %0 : i1 to i32
    %c0_i32_0 = arith.constant 0 : i32
    %2 = arith.cmpi ne, %1, %c0_i32_0 : i32
    scf.if %2 {
      %cst_70 = arith.constant 0.000000e+00 : f32
      %217 = vector.broadcast %cst_70 : f32 to vector<8x32xf32>
      %c0_71 = arith.constant 0 : index
      %c0_72 = arith.constant 0 : index
      %218 = vector.load %arg13[%c0_71, %c0_72] : memref<8x32xf32, #tpu.memory_space<vmem>>, vector<8x32xf32>
      tpu.vector_store %arg13[%c0_71, %c0_72], %217 {strides = array<i32>} : memref<8x32xf32, #tpu.memory_space<vmem>>, vector<8x32xf32>,
      %cst_73 = arith.constant 0.000000e+00 : f32
      %219 = vector.broadcast %cst_73 : f32 to vector<8x32xf32>
      %c0_74 = arith.constant 0 : index
      %c0_75 = arith.constant 0 : index
      %220 = vector.load %arg14[%c0_74, %c0_75] : memref<8x32xf32, #tpu.memory_space<vmem>>, vector<8x32xf32>
      tpu.vector_store %arg14[%c0_74, %c0_75], %219 {strides = array<i32>} : memref<8x32xf32, #tpu.memory_space<vmem>>, vector<8x32xf32>,
    } else {
    }
    %c0 = arith.constant 0 : index
    %c0_1 = arith.constant 0 : index
    %3 = vector.load %arg4[%c0, %c0_1] : memref<32x128xf32, #tpu.memory_space<vmem>>, vector<32x128xf32>
    %c0_2 = arith.constant 0 : index
    %c0_3 = arith.constant 0 : index
    %4 = vector.load %arg2[%c0_2, %c0_3] : memref<64x16xf32, #tpu.memory_space<vmem>>, vector<64x16xf32>
    %c0_4 = arith.constant 0 : index
    %c0_5 = arith.constant 0 : index
    %5 = vector.load %arg3[%c0_4, %c0_5] : memref<16x128xf32, #tpu.memory_space<vmem>>, vector<16x128xf32>
    %cst = arith.constant dense<0.000000e+00> : vector<64x128xf32>
    %6 = tpu.matmul %4, %5, %cst {dimension_numbers = #tpu.dot_dimension_numbers<[1], [0], [0], [1], [0, 0, 1, 1], [], []>} : vector<64x16xf32>, vector<16x128xf32>, vector<64x128xf32> -> vector<64x128xf32>
    %c0_6 = arith.constant 0 : index
    %c0_7 = arith.constant 0 : index
    %7 = vector.load %arg5[%c0_6, %c0_7] : memref<1x128xf32, #tpu.memory_space<vmem>>, vector<1x128xf32>
    %8 = vector.broadcast %7 : vector<1x128xf32> to vector<64x128xf32>
    %9 = arith.addf %6, %8 : vector<64x128xf32>
    %c0_8 = arith.constant 0 : index
    %c0_9 = arith.constant 0 : index
    %10 = vector.load %arg11[%c0_8, %c0_9] : memref<64x128xf32, #tpu.memory_space<vmem>>, vector<64x128xf32>
    tpu.vector_store %arg11[%c0_8, %c0_9], %9 {strides = array<i32>} : memref<64x128xf32, #tpu.memory_space<vmem>>, vector<64x128xf32>,
    %c0_10 = arith.constant 0 : index
    %c0_11 = arith.constant 0 : index
    %11 = vector.load %arg13[%c0_10, %c0_11] : memref<8x32xf32, #tpu.memory_space<vmem>>, vector<8x32xf32>
    %c0_12 = arith.constant 0 : index
    %c0_13 = arith.constant 0 : index
    %12 = vector.load %arg14[%c0_12, %c0_13] : memref<8x32xf32, #tpu.memory_space<vmem>>, vector<8x32xf32>
    %c0_i32_14 = arith.constant 0 : i32
    %c8_i32 = arith.constant 8 : i32
    %13 = arith.muli %c0_i32_14, %c8_i32 : i32
    %14 = tpu.assume_multiple %13, 8 : i32
    %15 = arith.index_cast %14 : i32 to index
    %c0_15 = arith.constant 0 : index
    %16 = vector.load %arg11[%15, %c0_15] : memref<64x128xf32, #tpu.memory_space<vmem>>, vector<8x128xf32>
    %cst_16 = arith.constant dense<0.000000e+00> : vector<8x128xf32>
    %17 = tpu.matmul %12, %3, %cst_16 {dimension_numbers = #tpu.dot_dimension_numbers<[1], [0], [0], [1], [0, 0, 1, 1], [], []>} : vector<8x32xf32>, vector<32x128xf32>, vector<8x128xf32> -> vector<8x128xf32>
    %18 = arith.addf %16, %17 : vector<8x128xf32>
    %19 = vector.extract_strided_slice %18 {offsets = [0, 0], sizes = [8, 96], strides = [1, 1]} : vector<8x128xf32> to vector<8x96xf32>
    %20 = arith.negf %19 : vector<8x96xf32>
    %21 = math.exp %20 : vector<8x96xf32>
    %cst_17 = arith.constant 1.000000e+00 : f32
    %22 = vector.broadcast %cst_17 : f32 to vector<8x96xf32>
    %23 = arith.addf %22, %21 : vector<8x96xf32>
    %24 = arith.divf %22, %23 : vector<8x96xf32>
    %25 = vector.extract_strided_slice %24 {offsets = [0, 0], sizes = [8, 32], strides = [1, 1]} : vector<8x96xf32> to vector<8x32xf32>
    %26 = vector.extract_strided_slice %24 {offsets = [0, 32], sizes = [8, 32], strides = [1, 1]} : vector<8x96xf32> to vector<8x32xf32>
    %27 = vector.extract_strided_slice %24 {offsets = [0, 64], sizes = [8, 32], strides = [1, 1]} : vector<8x96xf32> to vector<8x32xf32>
    %28 = vector.extract_strided_slice %18 {offsets = [0, 96], sizes = [8, 32], strides = [1, 1]} : vector<8x128xf32> to vector<8x32xf32>
    %29 = math.tanh %28 : vector<8x32xf32>
    %30 = arith.mulf %26, %11 : vector<8x32xf32>
    %31 = arith.mulf %25, %29 : vector<8x32xf32>
    %32 = arith.addf %30, %31 : vector<8x32xf32>
    %33 = math.tanh %32 : vector<8x32xf32>
    %34 = arith.mulf %27, %33 : vector<8x32xf32>
    %35 = arith.index_cast %14 : i32 to index
    %c0_18 = arith.constant 0 : index
    %36 = vector.load %arg12[%35, %c0_18] : memref<64x32xf32, #tpu.memory_space<vmem>>, vector<8x32xf32>
    tpu.vector_store %arg12[%35, %c0_18], %34 {strides = array<i32>} : memref<64x32xf32, #tpu.memory_space<vmem>>, vector<8x32xf32>,
    %c1_i32 = arith.constant 1 : i32
    %c8_i32_19 = arith.constant 8 : i32
    %37 = arith.muli %c1_i32, %c8_i32_19 : i32
    %38 = tpu.assume_multiple %37, 8 : i32
    %39 = arith.index_cast %38 : i32 to index
    %c0_20 = arith.constant 0 : index
    %40 = vector.load %arg11[%39, %c0_20] : memref<64x128xf32, #tpu.memory_space<vmem>>, vector<8x128xf32>
    %cst_21 = arith.constant dense<0.000000e+00> : vector<8x128xf32>
    %41 = tpu.matmul %34, %3, %cst_21 {dimension_numbers = #tpu.dot_dimension_numbers<[1], [0], [0], [1], [0, 0, 1, 1], [], []>} : vector<8x32xf32>, vector<32x128xf32>, vector<8x128xf32> -> vector<8x128xf32>
    %42 = arith.addf %40, %41 : vector<8x128xf32>
    %43 = vector.extract_strided_slice %42 {offsets = [0, 0], sizes = [8, 96], strides = [1, 1]} : vector<8x128xf32> to vector<8x96xf32>
    %44 = arith.negf %43 : vector<8x96xf32>
    %45 = math.exp %44 : vector<8x96xf32>
    %cst_22 = arith.constant 1.000000e+00 : f32
    %46 = vector.broadcast %cst_22 : f32 to vector<8x96xf32>
    %47 = arith.addf %46, %45 : vector<8x96xf32>
    %48 = arith.divf %46, %47 : vector<8x96xf32>
    %49 = vector.extract_strided_slice %48 {offsets = [0, 0], sizes = [8, 32], strides = [1, 1]} : vector<8x96xf32> to vector<8x32xf32>
    %50 = vector.extract_strided_slice %48 {offsets = [0, 32], sizes = [8, 32], strides = [1, 1]} : vector<8x96xf32> to vector<8x32xf32>
    %51 = vector.extract_strided_slice %48 {offsets = [0, 64], sizes = [8, 32], strides = [1, 1]} : vector<8x96xf32> to vector<8x32xf32>
    %52 = vector.extract_strided_slice %42 {offsets = [0, 96], sizes = [8, 32], strides = [1, 1]} : vector<8x128xf32> to vector<8x32xf32>
    %53 = math.tanh %52 : vector<8x32xf32>
    %54 = arith.mulf %50, %32 : vector<8x32xf32>
    %55 = arith.mulf %49, %53 : vector<8x32xf32>
    %56 = arith.addf %54, %55 : vector<8x32xf32>
    %57 = math.tanh %56 : vector<8x32xf32>
    %58 = arith.mulf %51, %57 : vector<8x32xf32>
    %59 = arith.index_cast %38 : i32 to index
    %c0_23 = arith.constant 0 : index
    %60 = vector.load %arg12[%59, %c0_23] : memref<64x32xf32, #tpu.memory_space<vmem>>, vector<8x32xf32>
    tpu.vector_store %arg12[%59, %c0_23], %58 {strides = array<i32>} : memref<64x32xf32, #tpu.memory_space<vmem>>, vector<8x32xf32>,
    %c2_i32 = arith.constant 2 : i32
    %c8_i32_24 = arith.constant 8 : i32
    %61 = arith.muli %c2_i32, %c8_i32_24 : i32
    %62 = tpu.assume_multiple %61, 8 : i32
    %63 = arith.index_cast %62 : i32 to index
    %c0_25 = arith.constant 0 : index
    %64 = vector.load %arg11[%63, %c0_25] : memref<64x128xf32, #tpu.memory_space<vmem>>, vector<8x128xf32>
    %cst_26 = arith.constant dense<0.000000e+00> : vector<8x128xf32>
    %65 = tpu.matmul %58, %3, %cst_26 {dimension_numbers = #tpu.dot_dimension_numbers<[1], [0], [0], [1], [0, 0, 1, 1], [], []>} : vector<8x32xf32>, vector<32x128xf32>, vector<8x128xf32> -> vector<8x128xf32>
    %66 = arith.addf %64, %65 : vector<8x128xf32>
    %67 = vector.extract_strided_slice %66 {offsets = [0, 0], sizes = [8, 96], strides = [1, 1]} : vector<8x128xf32> to vector<8x96xf32>
    %68 = arith.negf %67 : vector<8x96xf32>
    %69 = math.exp %68 : vector<8x96xf32>
    %cst_27 = arith.constant 1.000000e+00 : f32
    %70 = vector.broadcast %cst_27 : f32 to vector<8x96xf32>
    %71 = arith.addf %70, %69 : vector<8x96xf32>
    %72 = arith.divf %70, %71 : vector<8x96xf32>
    %73 = vector.extract_strided_slice %72 {offsets = [0, 0], sizes = [8, 32], strides = [1, 1]} : vector<8x96xf32> to vector<8x32xf32>
    %74 = vector.extract_strided_slice %72 {offsets = [0, 32], sizes = [8, 32], strides = [1, 1]} : vector<8x96xf32> to vector<8x32xf32>
    %75 = vector.extract_strided_slice %72 {offsets = [0, 64], sizes = [8, 32], strides = [1, 1]} : vector<8x96xf32> to vector<8x32xf32>
    %76 = vector.extract_strided_slice %66 {offsets = [0, 96], sizes = [8, 32], strides = [1, 1]} : vector<8x128xf32> to vector<8x32xf32>
    %77 = math.tanh %76 : vector<8x32xf32>
    %78 = arith.mulf %74, %56 : vector<8x32xf32>
    %79 = arith.mulf %73, %77 : vector<8x32xf32>
    %80 = arith.addf %78, %79 : vector<8x32xf32>
    %81 = math.tanh %80 : vector<8x32xf32>
    %82 = arith.mulf %75, %81 : vector<8x32xf32>
    %83 = arith.index_cast %62 : i32 to index
    %c0_28 = arith.constant 0 : index
    %84 = vector.load %arg12[%83, %c0_28] : memref<64x32xf32, #tpu.memory_space<vmem>>, vector<8x32xf32>
    tpu.vector_store %arg12[%83, %c0_28], %82 {strides = array<i32>} : memref<64x32xf32, #tpu.memory_space<vmem>>, vector<8x32xf32>,
    %c3_i32 = arith.constant 3 : i32
    %c8_i32_29 = arith.constant 8 : i32
    %85 = arith.muli %c3_i32, %c8_i32_29 : i32
    %86 = tpu.assume_multiple %85, 8 : i32
    %87 = arith.index_cast %86 : i32 to index
    %c0_30 = arith.constant 0 : index
    %88 = vector.load %arg11[%87, %c0_30] : memref<64x128xf32, #tpu.memory_space<vmem>>, vector<8x128xf32>
    %cst_31 = arith.constant dense<0.000000e+00> : vector<8x128xf32>
    %89 = tpu.matmul %82, %3, %cst_31 {dimension_numbers = #tpu.dot_dimension_numbers<[1], [0], [0], [1], [0, 0, 1, 1], [], []>} : vector<8x32xf32>, vector<32x128xf32>, vector<8x128xf32> -> vector<8x128xf32>
    %90 = arith.addf %88, %89 : vector<8x128xf32>
    %91 = vector.extract_strided_slice %90 {offsets = [0, 0], sizes = [8, 96], strides = [1, 1]} : vector<8x128xf32> to vector<8x96xf32>
    %92 = arith.negf %91 : vector<8x96xf32>
    %93 = math.exp %92 : vector<8x96xf32>
    %cst_32 = arith.constant 1.000000e+00 : f32
    %94 = vector.broadcast %cst_32 : f32 to vector<8x96xf32>
    %95 = arith.addf %94, %93 : vector<8x96xf32>
    %96 = arith.divf %94, %95 : vector<8x96xf32>
    %97 = vector.extract_strided_slice %96 {offsets = [0, 0], sizes = [8, 32], strides = [1, 1]} : vector<8x96xf32> to vector<8x32xf32>
    %98 = vector.extract_strided_slice %96 {offsets = [0, 32], sizes = [8, 32], strides = [1, 1]} : vector<8x96xf32> to vector<8x32xf32>
    %99 = vector.extract_strided_slice %96 {offsets = [0, 64], sizes = [8, 32], strides = [1, 1]} : vector<8x96xf32> to vector<8x32xf32>
    %100 = vector.extract_strided_slice %90 {offsets = [0, 96], sizes = [8, 32], strides = [1, 1]} : vector<8x128xf32> to vector<8x32xf32>
    %101 = math.tanh %100 : vector<8x32xf32>
    %102 = arith.mulf %98, %80 : vector<8x32xf32>
    %103 = arith.mulf %97, %101 : vector<8x32xf32>
    %104 = arith.addf %102, %103 : vector<8x32xf32>
    %105 = math.tanh %104 : vector<8x32xf32>
    %106 = arith.mulf %99, %105 : vector<8x32xf32>
    %107 = arith.index_cast %86 : i32 to index
    %c0_33 = arith.constant 0 : index
    %108 = vector.load %arg12[%107, %c0_33] : memref<64x32xf32, #tpu.memory_space<vmem>>, vector<8x32xf32>
    tpu.vector_store %arg12[%107, %c0_33], %106 {strides = array<i32>} : memref<64x32xf32, #tpu.memory_space<vmem>>, vector<8x32xf32>,
    %c4_i32 = arith.constant 4 : i32
    %c8_i32_34 = arith.constant 8 : i32
    %109 = arith.muli %c4_i32, %c8_i32_34 : i32
    %110 = tpu.assume_multiple %109, 8 : i32
    %111 = arith.index_cast %110 : i32 to index
    %c0_35 = arith.constant 0 : index
    %112 = vector.load %arg11[%111, %c0_35] : memref<64x128xf32, #tpu.memory_space<vmem>>, vector<8x128xf32>
    %cst_36 = arith.constant dense<0.000000e+00> : vector<8x128xf32>
    %113 = tpu.matmul %106, %3, %cst_36 {dimension_numbers = #tpu.dot_dimension_numbers<[1], [0], [0], [1], [0, 0, 1, 1], [], []>} : vector<8x32xf32>, vector<32x128xf32>, vector<8x128xf32> -> vector<8x128xf32>
    %114 = arith.addf %112, %113 : vector<8x128xf32>
    %115 = vector.extract_strided_slice %114 {offsets = [0, 0], sizes = [8, 96], strides = [1, 1]} : vector<8x128xf32> to vector<8x96xf32>
    %116 = arith.negf %115 : vector<8x96xf32>
    %117 = math.exp %116 : vector<8x96xf32>
    %cst_37 = arith.constant 1.000000e+00 : f32
    %118 = vector.broadcast %cst_37 : f32 to vector<8x96xf32>
    %119 = arith.addf %118, %117 : vector<8x96xf32>
    %120 = arith.divf %118, %119 : vector<8x96xf32>
    %121 = vector.extract_strided_slice %120 {offsets = [0, 0], sizes = [8, 32], strides = [1, 1]} : vector<8x96xf32> to vector<8x32xf32>
    %122 = vector.extract_strided_slice %120 {offsets = [0, 32], sizes = [8, 32], strides = [1, 1]} : vector<8x96xf32> to vector<8x32xf32>
    %123 = vector.extract_strided_slice %120 {offsets = [0, 64], sizes = [8, 32], strides = [1, 1]} : vector<8x96xf32> to vector<8x32xf32>
    %124 = vector.extract_strided_slice %114 {offsets = [0, 96], sizes = [8, 32], strides = [1, 1]} : vector<8x128xf32> to vector<8x32xf32>
    %125 = math.tanh %124 : vector<8x32xf32>
    %126 = arith.mulf %122, %104 : vector<8x32xf32>
    %127 = arith.mulf %121, %125 : vector<8x32xf32>
    %128 = arith.addf %126, %127 : vector<8x32xf32>
    %129 = math.tanh %128 : vector<8x32xf32>
    %130 = arith.mulf %123, %129 : vector<8x32xf32>
    %131 = arith.index_cast %110 : i32 to index
    %c0_38 = arith.constant 0 : index
    %132 = vector.load %arg12[%131, %c0_38] : memref<64x32xf32, #tpu.memory_space<vmem>>, vector<8x32xf32>
    tpu.vector_store %arg12[%131, %c0_38], %130 {strides = array<i32>} : memref<64x32xf32, #tpu.memory_space<vmem>>, vector<8x32xf32>,
    %c5_i32 = arith.constant 5 : i32
    %c8_i32_39 = arith.constant 8 : i32
    %133 = arith.muli %c5_i32, %c8_i32_39 : i32
    %134 = tpu.assume_multiple %133, 8 : i32
    %135 = arith.index_cast %134 : i32 to index
    %c0_40 = arith.constant 0 : index
    %136 = vector.load %arg11[%135, %c0_40] : memref<64x128xf32, #tpu.memory_space<vmem>>, vector<8x128xf32>
    %cst_41 = arith.constant dense<0.000000e+00> : vector<8x128xf32>
    %137 = tpu.matmul %130, %3, %cst_41 {dimension_numbers = #tpu.dot_dimension_numbers<[1], [0], [0], [1], [0, 0, 1, 1], [], []>} : vector<8x32xf32>, vector<32x128xf32>, vector<8x128xf32> -> vector<8x128xf32>
    %138 = arith.addf %136, %137 : vector<8x128xf32>
    %139 = vector.extract_strided_slice %138 {offsets = [0, 0], sizes = [8, 96], strides = [1, 1]} : vector<8x128xf32> to vector<8x96xf32>
    %140 = arith.negf %139 : vector<8x96xf32>
    %141 = math.exp %140 : vector<8x96xf32>
    %cst_42 = arith.constant 1.000000e+00 : f32
    %142 = vector.broadcast %cst_42 : f32 to vector<8x96xf32>
    %143 = arith.addf %142, %141 : vector<8x96xf32>
    %144 = arith.divf %142, %143 : vector<8x96xf32>
    %145 = vector.extract_strided_slice %144 {offsets = [0, 0], sizes = [8, 32], strides = [1, 1]} : vector<8x96xf32> to vector<8x32xf32>
    %146 = vector.extract_strided_slice %144 {offsets = [0, 32], sizes = [8, 32], strides = [1, 1]} : vector<8x96xf32> to vector<8x32xf32>
    %147 = vector.extract_strided_slice %144 {offsets = [0, 64], sizes = [8, 32], strides = [1, 1]} : vector<8x96xf32> to vector<8x32xf32>
    %148 = vector.extract_strided_slice %138 {offsets = [0, 96], sizes = [8, 32], strides = [1, 1]} : vector<8x128xf32> to vector<8x32xf32>
    %149 = math.tanh %148 : vector<8x32xf32>
    %150 = arith.mulf %146, %128 : vector<8x32xf32>
    %151 = arith.mulf %145, %149 : vector<8x32xf32>
    %152 = arith.addf %150, %151 : vector<8x32xf32>
    %153 = math.tanh %152 : vector<8x32xf32>
    %154 = arith.mulf %147, %153 : vector<8x32xf32>
    %155 = arith.index_cast %134 : i32 to index
    %c0_43 = arith.constant 0 : index
    %156 = vector.load %arg12[%155, %c0_43] : memref<64x32xf32, #tpu.memory_space<vmem>>, vector<8x32xf32>
    tpu.vector_store %arg12[%155, %c0_43], %154 {strides = array<i32>} : memref<64x32xf32, #tpu.memory_space<vmem>>, vector<8x32xf32>,
    %c6_i32 = arith.constant 6 : i32
    %c8_i32_44 = arith.constant 8 : i32
    %157 = arith.muli %c6_i32, %c8_i32_44 : i32
    %158 = tpu.assume_multiple %157, 8 : i32
    %159 = arith.index_cast %158 : i32 to index
    %c0_45 = arith.constant 0 : index
    %160 = vector.load %arg11[%159, %c0_45] : memref<64x128xf32, #tpu.memory_space<vmem>>, vector<8x128xf32>
    %cst_46 = arith.constant dense<0.000000e+00> : vector<8x128xf32>
    %161 = tpu.matmul %154, %3, %cst_46 {dimension_numbers = #tpu.dot_dimension_numbers<[1], [0], [0], [1], [0, 0, 1, 1], [], []>} : vector<8x32xf32>, vector<32x128xf32>, vector<8x128xf32> -> vector<8x128xf32>
    %162 = arith.addf %160, %161 : vector<8x128xf32>
    %163 = vector.extract_strided_slice %162 {offsets = [0, 0], sizes = [8, 96], strides = [1, 1]} : vector<8x128xf32> to vector<8x96xf32>
    %164 = arith.negf %163 : vector<8x96xf32>
    %165 = math.exp %164 : vector<8x96xf32>
    %cst_47 = arith.constant 1.000000e+00 : f32
    %166 = vector.broadcast %cst_47 : f32 to vector<8x96xf32>
    %167 = arith.addf %166, %165 : vector<8x96xf32>
    %168 = arith.divf %166, %167 : vector<8x96xf32>
    %169 = vector.extract_strided_slice %168 {offsets = [0, 0], sizes = [8, 32], strides = [1, 1]} : vector<8x96xf32> to vector<8x32xf32>
    %170 = vector.extract_strided_slice %168 {offsets = [0, 32], sizes = [8, 32], strides = [1, 1]} : vector<8x96xf32> to vector<8x32xf32>
    %171 = vector.extract_strided_slice %168 {offsets = [0, 64], sizes = [8, 32], strides = [1, 1]} : vector<8x96xf32> to vector<8x32xf32>
    %172 = vector.extract_strided_slice %162 {offsets = [0, 96], sizes = [8, 32], strides = [1, 1]} : vector<8x128xf32> to vector<8x32xf32>
    %173 = math.tanh %172 : vector<8x32xf32>
    %174 = arith.mulf %170, %152 : vector<8x32xf32>
    %175 = arith.mulf %169, %173 : vector<8x32xf32>
    %176 = arith.addf %174, %175 : vector<8x32xf32>
    %177 = math.tanh %176 : vector<8x32xf32>
    %178 = arith.mulf %171, %177 : vector<8x32xf32>
    %179 = arith.index_cast %158 : i32 to index
    %c0_48 = arith.constant 0 : index
    %180 = vector.load %arg12[%179, %c0_48] : memref<64x32xf32, #tpu.memory_space<vmem>>, vector<8x32xf32>
    tpu.vector_store %arg12[%179, %c0_48], %178 {strides = array<i32>} : memref<64x32xf32, #tpu.memory_space<vmem>>, vector<8x32xf32>,
    %c7_i32 = arith.constant 7 : i32
    %c8_i32_49 = arith.constant 8 : i32
    %181 = arith.muli %c7_i32, %c8_i32_49 : i32
    %182 = tpu.assume_multiple %181, 8 : i32
    %183 = arith.index_cast %182 : i32 to index
    %c0_50 = arith.constant 0 : index
    %184 = vector.load %arg11[%183, %c0_50] : memref<64x128xf32, #tpu.memory_space<vmem>>, vector<8x128xf32>
    %cst_51 = arith.constant dense<0.000000e+00> : vector<8x128xf32>
    %185 = tpu.matmul %178, %3, %cst_51 {dimension_numbers = #tpu.dot_dimension_numbers<[1], [0], [0], [1], [0, 0, 1, 1], [], []>} : vector<8x32xf32>, vector<32x128xf32>, vector<8x128xf32> -> vector<8x128xf32>
    %186 = arith.addf %184, %185 : vector<8x128xf32>
    %187 = vector.extract_strided_slice %186 {offsets = [0, 0], sizes = [8, 96], strides = [1, 1]} : vector<8x128xf32> to vector<8x96xf32>
    %188 = arith.negf %187 : vector<8x96xf32>
    %189 = math.exp %188 : vector<8x96xf32>
    %cst_52 = arith.constant 1.000000e+00 : f32
    %190 = vector.broadcast %cst_52 : f32 to vector<8x96xf32>
    %191 = arith.addf %190, %189 : vector<8x96xf32>
    %192 = arith.divf %190, %191 : vector<8x96xf32>
    %193 = vector.extract_strided_slice %192 {offsets = [0, 0], sizes = [8, 32], strides = [1, 1]} : vector<8x96xf32> to vector<8x32xf32>
    %194 = vector.extract_strided_slice %192 {offsets = [0, 32], sizes = [8, 32], strides = [1, 1]} : vector<8x96xf32> to vector<8x32xf32>
    %195 = vector.extract_strided_slice %192 {offsets = [0, 64], sizes = [8, 32], strides = [1, 1]} : vector<8x96xf32> to vector<8x32xf32>
    %196 = vector.extract_strided_slice %186 {offsets = [0, 96], sizes = [8, 32], strides = [1, 1]} : vector<8x128xf32> to vector<8x32xf32>
    %197 = math.tanh %196 : vector<8x32xf32>
    %198 = arith.mulf %194, %176 : vector<8x32xf32>
    %199 = arith.mulf %193, %197 : vector<8x32xf32>
    %200 = arith.addf %198, %199 : vector<8x32xf32>
    %201 = math.tanh %200 : vector<8x32xf32>
    %202 = arith.mulf %195, %201 : vector<8x32xf32>
    %203 = arith.index_cast %182 : i32 to index
    %c0_53 = arith.constant 0 : index
    %204 = vector.load %arg12[%203, %c0_53] : memref<64x32xf32, #tpu.memory_space<vmem>>, vector<8x32xf32>
    tpu.vector_store %arg12[%203, %c0_53], %202 {strides = array<i32>} : memref<64x32xf32, #tpu.memory_space<vmem>>, vector<8x32xf32>,
    %c8_i32_54 = arith.constant 8 : i32
    %c0_55 = arith.constant 0 : index
    %c0_56 = arith.constant 0 : index
    %205 = vector.load %arg13[%c0_55, %c0_56] : memref<8x32xf32, #tpu.memory_space<vmem>>, vector<8x32xf32>
    tpu.vector_store %arg13[%c0_55, %c0_56], %200 {strides = array<i32>} : memref<8x32xf32, #tpu.memory_space<vmem>>, vector<8x32xf32>,
    %c0_57 = arith.constant 0 : index
    %c0_58 = arith.constant 0 : index
    %206 = vector.load %arg14[%c0_57, %c0_58] : memref<8x32xf32, #tpu.memory_space<vmem>>, vector<8x32xf32>
    tpu.vector_store %arg14[%c0_57, %c0_58], %202 {strides = array<i32>} : memref<8x32xf32, #tpu.memory_space<vmem>>, vector<8x32xf32>,
    %c0_59 = arith.constant 0 : index
    %c0_60 = arith.constant 0 : index
    %207 = vector.load %arg12[%c0_59, %c0_60] : memref<64x32xf32, #tpu.memory_space<vmem>>, vector<64x32xf32>
    %c0_61 = arith.constant 0 : index
    %c0_62 = arith.constant 0 : index
    %208 = vector.load %arg6[%c0_61, %c0_62] : memref<32x128xf32, #tpu.memory_space<vmem>>, vector<32x128xf32>
    %cst_63 = arith.constant dense<0.000000e+00> : vector<64x128xf32>
    %209 = tpu.matmul %207, %208, %cst_63 {dimension_numbers = #tpu.dot_dimension_numbers<[1], [0], [0], [1], [0, 0, 1, 1], [], []>} : vector<64x32xf32>, vector<32x128xf32>, vector<64x128xf32> -> vector<64x128xf32>
    %c0_64 = arith.constant 0 : index
    %c0_65 = arith.constant 0 : index
    %210 = vector.load %arg7[%c0_64, %c0_65] : memref<1x128xf32, #tpu.memory_space<vmem>>, vector<1x128xf32>
    %211 = vector.broadcast %210 : vector<1x128xf32> to vector<64x128xf32>
    %212 = arith.addf %209, %211 : vector<64x128xf32>
    %c0_66 = arith.constant 0 : index
    %c0_67 = arith.constant 0 : index
    %213 = vector.load %arg8[%c0_66, %c0_67] : memref<64x128xf32, #tpu.memory_space<vmem>>, vector<64x128xf32>
    tpu.vector_store %arg8[%c0_66, %c0_67], %212 {strides = array<i32>} : memref<64x128xf32, #tpu.memory_space<vmem>>, vector<64x128xf32>,
    %c0_i32_68 = arith.constant 0 : i32
    %214 = arith.cmpi eq, %arg1, %c0_i32_68 : i32
    %215 = arith.extui %214 : i1 to i32
    %c0_i32_69 = arith.constant 0 : i32
    %216 = arith.cmpi ne, %215, %c0_i32_69 : i32
    scf.if %216 {
      %c0_70 = arith.constant 0 : index
      %c0_71 = arith.constant 0 : index
      %217 = vector.load %arg9[%c0_70, %c0_71] : memref<8x32xf32, #tpu.memory_space<vmem>>, vector<8x32xf32>
      tpu.vector_store %arg9[%c0_70, %c0_71], %200 {strides = array<i32>} : memref<8x32xf32, #tpu.memory_space<vmem>>, vector<8x32xf32>,
      %c0_72 = arith.constant 0 : index
      %c0_73 = arith.constant 0 : index
      %218 = vector.load %arg10[%c0_72, %c0_73] : memref<8x32xf32, #tpu.memory_space<vmem>>, vector<8x32xf32>
      tpu.vector_store %arg10[%c0_72, %c0_73], %202 {strides = array<i32>} : memref<8x32xf32, #tpu.memory_space<vmem>>, vector<8x32xf32>,
    } else {
    }
    return
  }
  func.func @transform_0(%arg0: i32, %arg1: i32) -> (i32, i32) {
    %c1_i32 = arith.constant 1 : i32
    %0 = arith.muli %arg0, %c1_i32 : i32
    %1 = arith.addi %0, %arg1 : i32
    %c0_i32 = arith.constant 0 : i32
    %c0_i32_0 = arith.constant 0 : i32
    return %1, %c0_i32 : i32, i32
  }
  func.func @transform_1(%arg0: i32, %arg1: i32) -> (i32, i32) {
    %c0_i32 = arith.constant 0 : i32
    %c0_i32_0 = arith.constant 0 : i32
    %c0_i32_1 = arith.constant 0 : i32
    return %c0_i32, %c0_i32_0 : i32, i32
  }
  func.func @transform_2(%arg0: i32, %arg1: i32) -> (i32, i32) {
    %c0_i32 = arith.constant 0 : i32
    %c0_i32_0 = arith.constant 0 : i32
    %c0_i32_1 = arith.constant 0 : i32
    return %c0_i32, %c0_i32_0 : i32, i32
  }
  func.func @transform_3(%arg0: i32, %arg1: i32) -> (i32, i32) {
    %c0_i32 = arith.constant 0 : i32
    %c0_i32_0 = arith.constant 0 : i32
    %c0_i32_1 = arith.constant 0 : i32
    return %c0_i32, %c0_i32_0 : i32, i32
  }
  func.func @transform_4(%arg0: i32, %arg1: i32) -> (i32, i32) {
    %c0_i32 = arith.constant 0 : i32
    %c0_i32_0 = arith.constant 0 : i32
    %c0_i32_1 = arith.constant 0 : i32
    return %c0_i32, %c0_i32_0 : i32, i32
  }
  func.func @transform_5(%arg0: i32, %arg1: i32) -> (i32, i32) {
    %c0_i32 = arith.constant 0 : i32
    %c0_i32_0 = arith.constant 0 : i32
    %c0_i32_1 = arith.constant 0 : i32
    return %c0_i32, %c0_i32_0 : i32, i32
  }
  func.func @transform_6(%arg0: i32, %arg1: i32) -> (i32, i32) {
    %c1_i32 = arith.constant 1 : i32
    %0 = arith.muli %arg0, %c1_i32 : i32
    %1 = arith.addi %0, %arg1 : i32
    %c0_i32 = arith.constant 0 : i32
    %c0_i32_0 = arith.constant 0 : i32
    return %1, %c0_i32 : i32, i32
  }
  func.func @transform_7(%arg0: i32, %arg1: i32) -> (i32, i32) {
    %c0_i32 = arith.constant 0 : i32
    %c0_i32_0 = arith.constant 0 : i32
    return %arg0, %c0_i32 : i32, i32
  }
  func.func @transform_8(%arg0: i32, %arg1: i32) -> (i32, i32) {
    %c0_i32 = arith.constant 0 : i32
    %c0_i32_0 = arith.constant 0 : i32
    return %arg0, %c0_i32 : i32, i32
  }
}

</mosaic_0001>

<bundles_post_ra>
// kernel: lstm_simple_forward.1
= control target key start
LH: loop header
LB: loop body
LE: loop exit
PB: predicated region body
PF: predicated region fallthrough
CT: control target
= control target key end

     0   :  { %vm66_vm0 = vcmask 261120   ;;  %v959_v2 = vmov 0.0   ;;  %vm87_vm1 = vcmask 130048   ;;  %s960_s21 = smov 32   ;;  %s962_s10 = smov 96   ;;  %s1236_s1 = inlined_call_operand.vmem [shape: f32[16,128], index: 1, kind: input, shape index: {}]   ;;  %s1237_s0 = inlined_call_operand.vmem [shape: f32[64,16], index: 0, kind: input, shape index: {}]   ;;  %s1238_s2 = inlined_call_operand.vmem [shape: f32[32,128], index: 2, kind: input, shape index: {}]   ;;  %s1239_s3 = inlined_call_operand.vmem [shape: f32[1,128], index: 3, kind: input, shape index: {}]   ;;  %s1240_s4 = inlined_call_operand.vmem [shape: f32[32,128], index: 4, kind: input, shape index: {}]   ;;  %s1241_s5 = inlined_call_operand.vmem [shape: f32[1,128], index: 5, kind: input, shape index: {}]   ;;  %s1242_s6 = inlined_call_operand.vmem [shape: f32[64,128], index: 6, kind: output, shape index: {0}]   ;;  %s1243_s7 = inlined_call_operand.vmem [shape: f32[8,32], index: 7, kind: output, shape index: {1}]   ;;  %s1244_s8 = inlined_call_operand.vmem [shape: f32[8,32], index: 8, kind: output, shape index: {2}]  }
   0x1   :  { %v82_v0 = vld [vmem:[%s1236_s1 + $0x8] sm:$0xff]  ;;  %v81_v1 = vld [vmem:[%s1236_s1] sm:$0xff]  ;;  %68 = vst.msk [vmem:[#allocation5] sm:$0xff] %vm66_vm0, %v959_v2  ;;  %v80_v3 = vld [vmem:[%s1237_s0 + $0x38] sm:$0xff] }
   0x2   :  { %883 = vmatpush.msra.mxu2 %v82_v0  ;;  %v1021_v4 = vld [vmem:[%s1238_s2 + $0x18] sm:$0xff]  ;;  %67 = vst.msk [vmem:[#allocation4] sm:$0xff] %vm66_vm0, %v959_v2  ;;  %126 = vmatpush.msra.mxu0 %v82_v0  ;;  %v73_v5 = vld [vmem:[%s1237_s0] sm:$0xff]  ;;  %v1033_v6 = vld [vmem:[%s1238_s2 + $0x10] sm:$0xff] }
   0x3   :  { %319 = vmatpush.msra.mxu3 %v1021_v4  ;;  %387 = vmatpush.msra.mxu1 %v1021_v4  ;;  %v1041_v7 = vld [vmem:[%s1238_s2 + $0x8] sm:$0xff]  ;;  %v1049_v8 = vld [vmem:[%s1238_s2] sm:$0xff] }
   0x4   :  { %884 = vmatpush.msra.mxu2 %v81_v1  ;;  %127 = vmatpush.msra.mxu0 %v81_v1  ;;  %v1078_v12 = vld [vmem:[%s1239_s3] ss:$0 sm:$0xff]  ;;  %s961_s3 = smov 64   ;;  %v74_v40 = vld [vmem:[%s1237_s0 + $0x8] sm:$0xff] }
   0x5   :  { %858 = vmatmul.msk.f32.vlgmr.msra.gmra.mxu2 %vm87_vm1, %v80_v3  ;;  %851 = vmatmul.msk.f32.vlgmr.msra.gmra.mxu0 %vm87_vm1, %v73_v5 }
   0x6   :  { %180 = vmatpush.msrb.mxu2 %v1021_v4  ;;  %320 = vmatpush.msra.mxu3 %v1033_v6 }
   0x7   :  { %388 = vmatpush.msra.mxu1 %v1033_v6 }
   0x8   :  { %181 = vmatpush.msrb.mxu2 %v1033_v6  ;;  %321 = vmatpush.msra.mxu3 %v1041_v7  ;;  %v162_v9 = vld [vmem:[#allocation5] sm:$0xff] }
   0x9   :  { %389 = vmatpush.msra.mxu1 %v1041_v7  ;;  %v161_v17 = vld [vmem:[#allocation4] sm:$0xff] }
   0xa   :  { %182 = vmatpush.msrb.mxu2 %v1041_v7  ;;  %322 = vmatpush.msra.mxu3 %v1049_v8 }
   0xb   :  { %390 = vmatpush.msra.mxu1 %v1049_v8 }
   0xc   :  { %523 = vmatpush.msrb.mxu3 %v1021_v4  ;;  %183 = vmatpush.msrb.mxu2 %v1049_v8 }
   0xd   :  { %591 = vmatpush.msrb.mxu1 %v1021_v4  ;;  %859 = vmatmul.msk.f32.vlgmr.msrb.gmra.mxu2 %vm66_vm0, %v162_v9 }
   0xe   :  { %524 = vmatpush.msrb.mxu3 %v1033_v6  ;;  %251 = vmatpush.msra.mxu2 %v1021_v4 }
   0xf   :  { %592 = vmatpush.msrb.mxu1 %v1033_v6  ;;  %852 = vmatmul.msk.f32.gmra.mxu0 %vm87_vm1, %v74_v40 }
  0x10   :  { %525 = vmatpush.msrb.mxu3 %v1041_v7  ;;  %252 = vmatpush.msra.mxu2 %v1033_v6 }
  0x11   :  { %593 = vmatpush.msrb.mxu1 %v1041_v7 }
  0x12   :  { %526 = vmatpush.msrb.mxu3 %v1049_v8  ;;  %253 = vmatpush.msra.mxu2 %v1041_v7 }
  0x13   :  { %594 = vmatpush.msrb.mxu1 %v1049_v8 }
  0x14   :  { %254 = vmatpush.msra.mxu2 %v1049_v8 }
  0x16   :  { %455 = vmatpush.msrb.mxu2 %v1021_v4 }
  0x18   :  { %456 = vmatpush.msrb.mxu2 %v1033_v6 }
  0x1a   :  { %457 = vmatpush.msrb.mxu2 %v1041_v7 }
  0x1c   :  { %458 = vmatpush.msrb.mxu2 %v1049_v8 }
  0x82   :  { %v129_v11 = vpop.f32.mrf.mxu0 }
  0x83   :  { %v130_v13 = vadd.f32 %v1078_v12, %v129_v11 }
  0x88   :  { %v1073_v10 = vpop.f32.mrf.mxu2 }
  0x8c   :  { %v132_v42 = vpop.f32.mrf.mxu0 }
  0x8d   :  { %v133_v43 = vadd.f32 %v1078_v12, %v132_v42 }
  0x90   :  { %v185_v14 = vpop.f32.mrf.mxu2 }
  0x91   :  { %v188_v15 = vadd.f32 %v185_v14, %v130_v13 }
  0x93   :  { %895 = vtanh.f32 %v188_v15  ;;  %v860_v18 = vmul.f32 -1.442695, %v188_v15 }
  0x95   :  { %897 = vpow2.f32 %v860_v18 }
  0x99   :  { %v896_v16 = vpop.eup %895 }
  0x9a   :  { %215 = vrot.lane.b32.xlu0 %v896_v16, %s960_s21 }
  0x9b   :  { %v898_v19 = vpop.eup %897 }
  0x9c   :  { %v192_v20 = vadd.f32 1.0, %v898_v19 }
  0x9e   :  { %899 = vrcp.f32 %v192_v20  ;;  %v204_v26 = vand.u32 2147483648, %v192_v20  ;;  %vm198_vm3 = vweird.f32 %v192_v20  ;;  %v202_v27 = vand.u32 2147483647, %v192_v20 }
  0xa0   :  { %v205_v29 = vor.u32 1.1754944e-38, %v204_v26  ;;  %vm203_vm5 = vcmp.eq.f32.partialorder %v202_v27, 8.507059e+37 }
  0xa2   :  { %210 = vrot.lane.b32.xlu0 %v161_v17, %s960_s21 }
  0xa4   :  { %v900_v21 = vpop.eup %899 }
  0xa5   :  { %v194_v22 = vmul.f32 %v900_v21, %v192_v20  ;;  %vm199_vm2 = vweird.f32 %v900_v21 }
  0xa6   :  { %vm200_vm4 = vmor %vm198_vm3, %vm199_vm2 }
  0xa7   :  { %v195_v23 = vsub.f32 1.0, %v194_v22 }
  0xa9   :  { %v196_v24 = vmul.f32 %v900_v21, %v195_v23 }
  0xab   :  { %v197_v25 = vadd.f32 %v900_v21, %v196_v24 }
  0xad   :  { %v201_v28 = vsel %vm200_vm4, %v900_v21, %v197_v25 }
  0xae   :  { %v206_v31 = vsel %vm203_vm5, %v205_v29, %v201_v28 }
 0x10c   :  { %v216_v30 = vpop.permute.xlu0 %215 }
 0x10d   :  { %v218_v32 = vmul.f32 %v216_v30, %v206_v31 }
 0x10f   :  { %220 = vrot.lane.b32.xlu1 %v218_v32, %s960_s21  ;;  %v76_v32 = vld [vmem:[%s1237_s0 + $0x18] sm:$0xff] }
 0x114   :  { %v211_v33 = vpop.permute.xlu0 %210 }
 0x115   :  { %v213_v34 = vmul.f32 %v211_v33, %v206_v31 }
 0x181   :  { %v221_v35 = vpop.permute.xlu1 %220 }
 0x182   :  { %v223_v36 = vadd.f32 %v221_v35, %v213_v34 }
 0x184   :  { %901 = vtanh.f32 %v223_v36 }
 0x18a   :  { %v902_v37 = vpop.eup %901 }
 0x18b   :  { %226 = vrot.lane.b32.xlu1 %v902_v37, %s960_s21 }
 0x1fd   :  { %v227_v38 = vpop.permute.xlu1 %226 }
 0x1fe   :  { %v229_v39 = vmul.f32 %v227_v38, %v206_v31 }
 0x200   :  { %231 = vrot.lane.b32.xlu2 %v229_v39, %s961_s3 }
 0x25a   :  { %v232_v41 = vpop.permute.xlu2 %231 }
 0x25b   :  { %234 = vst.msk [vmem:[#allocation3] sm:$0xff] %vm66_vm0, %v232_v41  ;;  %861 = vmatmul.msk.f32.vlgmr.msra.gmra.mxu2 %vm66_vm0, %v232_v41 }
 0x25c   :  { %659 = vmatpush.msra.mxu2 %v1021_v4  ;;  %v75_v4 = vld [vmem:[%s1237_s0 + $0x10] sm:$0xff] }
 0x25d   :  { %853 = vmatmul.msk.f32.gmra.mxu0 %vm87_vm1, %v75_v4 }
 0x25e   :  { %660 = vmatpush.msra.mxu2 %v1033_v6 }
 0x260   :  { %661 = vmatpush.msra.mxu2 %v1041_v7 }
 0x262   :  { %662 = vmatpush.msra.mxu2 %v1049_v8 }
 0x265   :  { %854 = vmatmul.msk.f32.gmra.mxu0 %vm87_vm1, %v76_v32  ;;  %v725_v32 = vld [vmem:[%s1240_s4] sm:$0xff] }
 0x2da   :  { %v135_v6 = vpop.f32.mrf.mxu0 }
 0x2db   :  { %v136_v7 = vadd.f32 %v1078_v12, %v135_v6 }
 0x2de   :  { %v256_v44 = vpop.f32.mrf.mxu2 }
 0x2df   :  { %v259_v45 = vadd.f32 %v256_v44, %v133_v43 }
 0x2e1   :  { %903 = vtanh.f32 %v259_v45  ;;  %v862_v47 = vmul.f32 -1.442695, %v259_v45 }
 0x2e3   :  { %905 = vpow2.f32 %v862_v47 }
 0x2e7   :  { %v904_v46 = vpop.eup %903 }
 0x2e8   :  { %282 = vrot.lane.b32.xlu2 %v904_v46, %s960_s21 }
 0x2e9   :  { %v906_v48 = vpop.eup %905 }
 0x2ea   :  { %v263_v49 = vadd.f32 1.0, %v906_v48 }
 0x2ec   :  { %907 = vrcp.f32 %v263_v49  ;;  %v275_v55 = vand.u32 2147483648, %v263_v49  ;;  %vm269_vm7 = vweird.f32 %v263_v49  ;;  %v273_v56 = vand.u32 2147483647, %v263_v49 }
 0x2ee   :  { %v276_v58 = vor.u32 1.1754944e-38, %v275_v55  ;;  %vm274_vm9 = vcmp.eq.f32.partialorder %v273_v56, 8.507059e+37 }
 0x2f2   :  { %v908_v50 = vpop.eup %907 }
 0x2f3   :  { %v265_v51 = vmul.f32 %v908_v50, %v263_v49  ;;  %vm270_vm6 = vweird.f32 %v908_v50 }
 0x2f4   :  { %vm271_vm8 = vmor %vm269_vm7, %vm270_vm6 }
 0x2f5   :  { %v266_v52 = vsub.f32 1.0, %v265_v51 }
 0x2f7   :  { %v267_v53 = vmul.f32 %v908_v50, %v266_v52 }
 0x2f9   :  { %v268_v54 = vadd.f32 %v908_v50, %v267_v53 }
 0x2fb   :  { %v272_v57 = vsel %vm271_vm8, %v908_v50, %v268_v54 }
 0x2fc   :  { %v277_v60 = vsel %vm274_vm9, %v276_v58, %v272_v57 }
 0x2fd   :  { %v280_v62 = vmul.f32 %v277_v60, %v223_v36  ;;  %v138_v36 = vpop.f32.mrf.mxu0 }
 0x2fe   :  { %v139_v37 = vadd.f32 %v1078_v12, %v138_v36 }
 0x342   :  { %v283_v59 = vpop.permute.xlu2 %282 }
 0x343   :  { %v285_v61 = vmul.f32 %v283_v59, %v277_v60 }
 0x345   :  { %287 = vrot.lane.b32.xlu0 %v285_v61, %s960_s21 }
 0x3b7   :  { %v288_v63 = vpop.permute.xlu0 %287 }
 0x3b8   :  { %v290_v0 = vadd.f32 %v288_v63, %v280_v62  ;;  %v77_v62 = vld [vmem:[%s1237_s0 + $0x20] sm:$0xff] }
 0x3b9   :  { %855 = vmatmul.msk.f32.gmra.mxu0 %vm87_vm1, %v77_v62  ;;  %v79_v62 = vld [vmem:[%s1237_s0 + $0x30] sm:$0xff] }
 0x3ba   :  { %909 = vtanh.f32 %v290_v0 }
 0x3c0   :  { %v910_v1 = vpop.eup %909 }
 0x3c1   :  { %293 = vrot.lane.b32.xlu1 %v910_v1, %s960_s21 }
 0x433   :  { %v294_v2 = vpop.permute.xlu1 %293 }
 0x434   :  { %v296_v3 = vmul.f32 %v294_v2, %v277_v60 }
 0x436   :  { %298 = vrot.lane.b32.xlu2 %v296_v3, %s961_s3 }
 0x490   :  { %v299_v5 = vpop.permute.xlu2 %298 }
 0x491   :  { %302 = vst.msk [vmem:[#allocation3 + $0x8] sm:$0xff] %vm66_vm0, %v299_v5  ;;  %863 = vmatmul.msk.f32.vlgmr.msra.gmra.mxu3 %vm66_vm0, %v299_v5 }
 0x514   :  { %v324_v8 = vpop.f32.mrf.mxu3 }
 0x515   :  { %v327_v9 = vadd.f32 %v324_v8, %v136_v7 }
 0x517   :  { %911 = vtanh.f32 %v327_v9  ;;  %v864_v13 = vmul.f32 -1.442695, %v327_v9 }
 0x519   :  { %913 = vpow2.f32 %v864_v13 }
 0x51d   :  { %v912_v11 = vpop.eup %911 }
 0x51e   :  { %350 = vrot.lane.b32.xlu0 %v912_v11, %s960_s21 }
 0x51f   :  { %v914_v14 = vpop.eup %913 }
 0x520   :  { %v331_v15 = vadd.f32 1.0, %v914_v14 }
 0x522   :  { %915 = vrcp.f32 %v331_v15  ;;  %v343_v21 = vand.u32 2147483648, %v331_v15  ;;  %vm337_vm11 = vweird.f32 %v331_v15  ;;  %v341_v22 = vand.u32 2147483647, %v331_v15 }
 0x524   :  { %v344_v24 = vor.u32 1.1754944e-38, %v343_v21  ;;  %vm342_vm13 = vcmp.eq.f32.partialorder %v341_v22, 8.507059e+37 }
 0x528   :  { %v916_v16 = vpop.eup %915 }
 0x529   :  { %v333_v17 = vmul.f32 %v916_v16, %v331_v15  ;;  %vm338_vm10 = vweird.f32 %v916_v16 }
 0x52a   :  { %vm339_vm12 = vmor %vm337_vm11, %vm338_vm10 }
 0x52b   :  { %v334_v18 = vsub.f32 1.0, %v333_v17 }
 0x52d   :  { %v335_v19 = vmul.f32 %v916_v16, %v334_v18 }
 0x52f   :  { %v336_v20 = vadd.f32 %v916_v16, %v335_v19 }
 0x531   :  { %v340_v23 = vsel %vm339_vm12, %v916_v16, %v336_v20 }
 0x532   :  { %v345_v26 = vsel %vm342_vm13, %v344_v24, %v340_v23 }
 0x533   :  { %v348_v28 = vmul.f32 %v345_v26, %v290_v0  ;;  %v141_v0 = vpop.f32.mrf.mxu0 }
 0x534   :  { %v142_v1 = vadd.f32 %v1078_v12, %v141_v0 }
 0x590   :  { %v351_v25 = vpop.permute.xlu0 %350 }
 0x591   :  { %v353_v27 = vmul.f32 %v351_v25, %v345_v26 }
 0x593   :  { %355 = vrot.lane.b32.xlu1 %v353_v27, %s960_s21 }
 0x605   :  { %v356_v29 = vpop.permute.xlu1 %355 }
 0x606   :  { %v358_v30 = vadd.f32 %v356_v29, %v348_v28  ;;  %v728_v28 = vld [vmem:[%s1240_s4 + $0x18] sm:$0xff]  ;;  %v727_v29 = vld [vmem:[%s1240_s4 + $0x10] sm:$0xff] }
 0x607   :  { %885 = vmatpush.msra.mxu3 %v728_v28 }
 0x608   :  { %917 = vtanh.f32 %v358_v30 }
 0x609   :  { %886 = vmatpush.msra.mxu3 %v727_v29 }
 0x60e   :  { %v918_v31 = vpop.eup %917 }
 0x60f   :  { %361 = vrot.lane.b32.xlu2 %v918_v31, %s960_s21  ;;  %v726_v31 = vld [vmem:[%s1240_s4 + $0x8] sm:$0xff] }
 0x610   :  { %887 = vmatpush.msra.mxu3 %v726_v31 }
 0x612   :  { %888 = vmatpush.msra.mxu3 %v725_v32 }
 0x669   :  { %v362_v33 = vpop.permute.xlu2 %361 }
 0x66a   :  { %v364_v34 = vmul.f32 %v362_v33, %v345_v26 }
 0x66c   :  { %366 = vrot.lane.b32.xlu0 %v364_v34, %s961_s3 }
 0x6de   :  { %v367_v35 = vpop.permute.xlu0 %366 }
 0x6df   :  { %370 = vst.msk [vmem:[#allocation3 + $0x10] sm:$0xff] %vm66_vm0, %v367_v35  ;;  %865 = vmatmul.msk.f32.vlgmr.msra.gmra.mxu1 %vm66_vm0, %v367_v35 }
 0x6e0   :  { %769 = vmatpush.msra.mxu1 %v728_v28 }
 0x6e2   :  { %770 = vmatpush.msra.mxu1 %v727_v29 }
 0x6e4   :  { %771 = vmatpush.msra.mxu1 %v726_v31 }
 0x6e6   :  { %772 = vmatpush.msra.mxu1 %v725_v32 }
 0x75c   :  { %v392_v38 = vpop.f32.mrf.mxu1 }
 0x75d   :  { %v395_v39 = vadd.f32 %v392_v38, %v139_v37 }
 0x75f   :  { %919 = vtanh.f32 %v395_v39  ;;  %v866_v41 = vmul.f32 -1.442695, %v395_v39  ;;  %v1157_v39 = vld [vmem:[%s1241_s5] ss:$0 sm:$0xff] }
 0x761   :  { %921 = vpow2.f32 %v866_v41 }
 0x765   :  { %v920_v40 = vpop.eup %919 }
 0x766   :  { %418 = vrot.lane.b32.xlu1 %v920_v40, %s960_s21 }
 0x767   :  { %v922_v42 = vpop.eup %921 }
 0x768   :  { %v399_v43 = vadd.f32 1.0, %v922_v42 }
 0x76a   :  { %923 = vrcp.f32 %v399_v43  ;;  %v411_v49 = vand.u32 2147483648, %v399_v43  ;;  %vm405_vm15 = vweird.f32 %v399_v43  ;;  %v409_v50 = vand.u32 2147483647, %v399_v43 }
 0x76c   :  { %v412_v52 = vor.u32 1.1754944e-38, %v411_v49  ;;  %vm410_vm3 = vcmp.eq.f32.partialorder %v409_v50, 8.507059e+37 }
 0x770   :  { %v924_v44 = vpop.eup %923 }
 0x771   :  { %v401_v45 = vmul.f32 %v924_v44, %v399_v43  ;;  %vm406_vm14 = vweird.f32 %v924_v44 }
 0x772   :  { %vm407_vm2 = vmor %vm405_vm15, %vm406_vm14 }
 0x773   :  { %v402_v46 = vsub.f32 1.0, %v401_v45 }
 0x775   :  { %v403_v47 = vmul.f32 %v924_v44, %v402_v46 }
 0x777   :  { %v404_v48 = vadd.f32 %v924_v44, %v403_v47 }
 0x779   :  { %v408_v51 = vsel %vm407_vm2, %v924_v44, %v404_v48 }
 0x77a   :  { %v413_v54 = vsel %vm410_vm3, %v412_v52, %v408_v51 }
 0x77b   :  { %v416_v56 = vmul.f32 %v413_v54, %v358_v30  ;;  %v78_v30 = vld [vmem:[%s1237_s0 + $0x28] sm:$0xff] }
 0x77c   :  { %856 = vmatmul.msk.f32.gmra.mxu0 %vm87_vm1, %v78_v30 }
 0x784   :  { %857 = vmatmul.msk.f32.gmra.mxu0 %vm87_vm1, %v79_v62 }
 0x7d8   :  { %v419_v53 = vpop.permute.xlu1 %418 }
 0x7d9   :  { %v421_v55 = vmul.f32 %v419_v53, %v413_v54 }
 0x7db   :  { %423 = vrot.lane.b32.xlu2 %v421_v55, %s960_s21 }
 0x7f9   :  { %v144_v35 = vpop.f32.mrf.mxu0 }
 0x7fa   :  { %v145_v36 = vadd.f32 %v1078_v12, %v144_v35 }
 0x835   :  { %v424_v57 = vpop.permute.xlu2 %423 }
 0x836   :  { %v426_v58 = vadd.f32 %v424_v57, %v416_v56 }
 0x838   :  { %925 = vtanh.f32 %v426_v58 }
 0x83e   :  { %v926_v59 = vpop.eup %925 }
 0x83f   :  { %429 = vrot.lane.b32.xlu0 %v926_v59, %s960_s21 }
 0x8b1   :  { %v430_v60 = vpop.permute.xlu0 %429 }
 0x8b2   :  { %v432_v61 = vmul.f32 %v430_v60, %v413_v54 }
 0x8b4   :  { %434 = vrot.lane.b32.xlu1 %v432_v61, %s961_s3 }
 0x926   :  { %v435_v63 = vpop.permute.xlu1 %434 }
 0x927   :  { %438 = vst.msk [vmem:[#allocation3 + $0x18] sm:$0xff] %vm66_vm0, %v435_v63  ;;  %867 = vmatmul.msk.f32.vlgmr.msrb.gmra.mxu2 %vm66_vm0, %v435_v63 }
 0x9aa   :  { %v460_v2 = vpop.f32.mrf.mxu2 }
 0x9ab   :  { %v463_v3 = vadd.f32 %v460_v2, %v142_v1  ;;  %v717_v2 = vld [vmem:[#allocation3] sm:$0xff] }
 0x9ad   :  { %927 = vtanh.f32 %v463_v3  ;;  %v868_v5 = vmul.f32 -1.442695, %v463_v3 }
 0x9af   :  { %929 = vpow2.f32 %v868_v5  ;;  %v719_v5 = vld [vmem:[#allocation3 + $0x10] sm:$0xff] }
 0x9b3   :  { %v928_v4 = vpop.eup %927 }
 0x9b4   :  { %486 = vrot.lane.b32.xlu2 %v928_v4, %s960_s21  ;;  %v718_v4 = vld [vmem:[#allocation3 + $0x8] sm:$0xff] }
 0x9b5   :  { %v930_v6 = vpop.eup %929 }
 0x9b6   :  { %v467_v7 = vadd.f32 1.0, %v930_v6  ;;  %v720_v6 = vld [vmem:[#allocation3 + $0x18] sm:$0xff] }
 0x9b8   :  { %931 = vrcp.f32 %v467_v7  ;;  %v479_v15 = vand.u32 2147483648, %v467_v7  ;;  %vm473_vm5 = vweird.f32 %v467_v7  ;;  %v477_v16 = vand.u32 2147483647, %v467_v7 }
 0x9ba   :  { %v480_v18 = vor.u32 1.1754944e-38, %v479_v15  ;;  %vm478_vm7 = vcmp.eq.f32.partialorder %v477_v16, 8.507059e+37 }
 0x9be   :  { %v932_v8 = vpop.eup %931 }
 0x9bf   :  { %v469_v9 = vmul.f32 %v932_v8, %v467_v7  ;;  %vm474_vm4 = vweird.f32 %v932_v8  ;;  %v147_v7 = vpop.f32.mrf.mxu0 }
 0x9c0   :  { %vm475_vm6 = vmor %vm473_vm5, %vm474_vm4 }
 0x9c1   :  { %v470_v11 = vsub.f32 1.0, %v469_v9 }
 0x9c3   :  { %v471_v13 = vmul.f32 %v932_v8, %v470_v11 }
 0x9c5   :  { %v472_v14 = vadd.f32 %v932_v8, %v471_v13 }
 0x9c7   :  { %v476_v17 = vsel %vm475_vm6, %v932_v8, %v472_v14  ;;  %v148_v8 = vadd.f32 %v1078_v12, %v147_v7 }
 0x9c8   :  { %v481_v20 = vsel %vm478_vm7, %v480_v18, %v476_v17 }
 0x9c9   :  { %v484_v22 = vmul.f32 %v481_v20, %v426_v58 }
 0xa0e   :  { %v487_v19 = vpop.permute.xlu2 %486 }
 0xa0f   :  { %v489_v21 = vmul.f32 %v487_v19, %v481_v20 }
 0xa11   :  { %491 = vrot.lane.b32.xlu0 %v489_v21, %s960_s21 }
 0xa83   :  { %v492_v23 = vpop.permute.xlu0 %491 }
 0xa84   :  { %v494_v24 = vadd.f32 %v492_v23, %v484_v22 }
 0xa86   :  { %933 = vtanh.f32 %v494_v24 }
 0xa8c   :  { %v934_v25 = vpop.eup %933 }
 0xa8d   :  { %497 = vrot.lane.b32.xlu1 %v934_v25, %s960_s21 }
 0xaff   :  { %v498_v26 = vpop.permute.xlu1 %497 }
 0xb00   :  { %v500_v27 = vmul.f32 %v498_v26, %v481_v20 }
 0xb02   :  { %502 = vrot.lane.b32.xlu2 %v500_v27, %s961_s3 }
 0xb5c   :  { %v503_v33 = vpop.permute.xlu2 %502 }
 0xb5d   :  { %506 = vst.msk [vmem:[#allocation3 + $0x20] sm:$0xff] %vm66_vm0, %v503_v33  ;;  %869 = vmatmul.msk.f32.vlgmr.msrb.gmra.mxu3 %vm66_vm0, %v503_v33 }
 0xb64   :  { %v721_v34 = vld [vmem:[#allocation3 + $0x20] sm:$0xff] }
 0xb65   :  { %879 = vmatmul.msk.f32.vlgmr.msra.gmra.mxu3 %vm66_vm0, %v721_v34 }
 0xbe0   :  { %v528_v37 = vpop.f32.mrf.mxu3 }
 0xbe1   :  { %v531_v38 = vadd.f32 %v528_v37, %v145_v36 }
 0xbe3   :  { %935 = vtanh.f32 %v531_v38  ;;  %v870_v43 = vmul.f32 -1.442695, %v531_v38 }
 0xbe5   :  { %937 = vpow2.f32 %v870_v43 }
 0xbe8   :  { %v786_v40 = vpop.f32.mrf.mxu3 }
 0xbe9   :  { %v936_v41 = vpop.eup %935  ;;  %v787_v42 = vadd.f32 %v1157_v39, %v786_v40 }
 0xbea   :  { %554 = vrot.lane.b32.xlu0 %v936_v41, %s960_s21 }
 0xbeb   :  { %802 = vst [vmem:[%s1242_s6 + $0x20] sm:$0xff] %v787_v42  ;;  %v938_v44 = vpop.eup %937 }
 0xbec   :  { %v535_v45 = vadd.f32 1.0, %v938_v44 }
 0xbee   :  { %939 = vrcp.f32 %v535_v45  ;;  %v547_v51 = vand.u32 2147483648, %v535_v45  ;;  %vm541_vm9 = vweird.f32 %v535_v45  ;;  %v545_v52 = vand.u32 2147483647, %v535_v45 }
 0xbf0   :  { %v548_v54 = vor.u32 1.1754944e-38, %v547_v51  ;;  %vm546_vm11 = vcmp.eq.f32.partialorder %v545_v52, 8.507059e+37 }
 0xbf4   :  { %v940_v46 = vpop.eup %939 }
 0xbf5   :  { %v537_v47 = vmul.f32 %v940_v46, %v535_v45  ;;  %vm542_vm8 = vweird.f32 %v940_v46 }
 0xbf6   :  { %vm543_vm10 = vmor %vm541_vm9, %vm542_vm8 }
 0xbf7   :  { %v538_v48 = vsub.f32 1.0, %v537_v47 }
 0xbf9   :  { %v539_v49 = vmul.f32 %v940_v46, %v538_v48  ;;  %v151_v48 = vadd.f32 %v1078_v12, %v1073_v10 }
 0xbfb   :  { %v540_v50 = vadd.f32 %v940_v46, %v539_v49 }
 0xbfd   :  { %v544_v53 = vsel %vm543_vm10, %v940_v46, %v540_v50 }
 0xbfe   :  { %v549_v56 = vsel %vm546_vm11, %v548_v54, %v544_v53 }
 0xbff   :  { %v552_v58 = vmul.f32 %v549_v56, %v494_v24 }
 0xc5c   :  { %v555_v55 = vpop.permute.xlu0 %554 }
 0xc5d   :  { %v557_v57 = vmul.f32 %v555_v55, %v549_v56 }
 0xc5f   :  { %559 = vrot.lane.b32.xlu1 %v557_v57, %s960_s21 }
 0xcd1   :  { %v560_v59 = vpop.permute.xlu1 %559 }
 0xcd2   :  { %v1165_v60 = vadd.f32 %v560_v59, %v552_v58 }
 0xcd4   :  { %941 = vtanh.f32 %v1165_v60 }
 0xcda   :  { %v942_v61 = vpop.eup %941 }
 0xcdb   :  { %565 = vrot.lane.b32.xlu2 %v942_v61, %s960_s21 }
 0xd35   :  { %v566_v63 = vpop.permute.xlu2 %565 }
 0xd36   :  { %v568_v0 = vmul.f32 %v566_v63, %v549_v56 }
 0xd38   :  { %570 = vrot.lane.b32.xlu0 %v568_v0, %s961_s3 }
 0xdaa   :  { %v571_v1 = vpop.permute.xlu0 %570 }
 0xdab   :  { %574 = vst.msk [vmem:[#allocation3 + $0x28] sm:$0xff] %vm66_vm0, %v571_v1  ;;  %871 = vmatmul.msk.f32.vlgmr.msrb.gmra.mxu1 %vm66_vm0, %v571_v1 }
 0xdb2   :  { %v722_v3 = vld [vmem:[#allocation3 + $0x28] sm:$0xff] }
 0xdb3   :  { %875 = vmatmul.msk.f32.vlgmr.msra.gmra.mxu1 %vm66_vm0, %v717_v2  ;;  %880 = vmatmul.msk.f32.gmra.mxu3 %vm66_vm0, %v722_v3 }
 0xdbb   :  { %876 = vmatmul.msk.f32.gmra.mxu1 %vm66_vm0, %v718_v4 }
 0xdc3   :  { %877 = vmatmul.msk.f32.gmra.mxu1 %vm66_vm0, %v719_v5 }
 0xdcb   :  { %878 = vmatmul.msk.f32.gmra.mxu1 %vm66_vm0, %v720_v6 }
 0xe28   :  { %v596_v9 = vpop.f32.mrf.mxu1 }
 0xe29   :  { %v599_v11 = vadd.f32 %v596_v9, %v148_v8 }
 0xe2b   :  { %943 = vtanh.f32 %v599_v11  ;;  %v872_v24 = vmul.f32 -1.442695, %v599_v11 }
 0xe2d   :  { %945 = vpow2.f32 %v872_v24 }
 0xe30   :  { %v774_v13 = vpop.f32.mrf.mxu1 }
 0xe31   :  { %v944_v14 = vpop.eup %943  ;;  %v775_v15 = vadd.f32 %v1157_v39, %v774_v13 }
 0xe32   :  { %622 = vrot.lane.b32.xlu1 %v944_v14, %s960_s21 }
 0xe33   :  { %798 = vst [vmem:[%s1242_s6] sm:$0xff] %v775_v15  ;;  %v946_v25 = vpop.eup %945 }
 0xe34   :  { %v603_v26 = vadd.f32 1.0, %v946_v25 }
 0xe36   :  { %v789_v16 = vpop.f32.mrf.mxu3  ;;  %947 = vrcp.f32 %v603_v26  ;;  %v615_v32 = vand.u32 2147483648, %v603_v26  ;;  %vm609_vm12 = vweird.f32 %v603_v26  ;;  %v613_v33 = vand.u32 2147483647, %v603_v26 }
 0xe37   :  { %v790_v17 = vadd.f32 %v1157_v39, %v789_v16 }
 0xe38   :  { %v777_v18 = vpop.f32.mrf.mxu1  ;;  %v616_v35 = vor.u32 1.1754944e-38, %v615_v32  ;;  %vm614_vm14 = vcmp.eq.f32.partialorder %v613_v33, 8.507059e+37 }
 0xe39   :  { %803 = vst [vmem:[%s1242_s6 + $0x28] sm:$0xff] %v790_v17  ;;  %v778_v19 = vadd.f32 %v1157_v39, %v777_v18 }
 0xe3b   :  { %799 = vst [vmem:[%s1242_s6 + $0x8] sm:$0xff] %v778_v19 }
 0xe3c   :  { %v948_v27 = vpop.eup %947 }
 0xe3d   :  { %v605_v28 = vmul.f32 %v948_v27, %v603_v26  ;;  %vm610_vm1 = vweird.f32 %v948_v27 }
 0xe3e   :  { %vm611_vm13 = vmor %vm609_vm12, %vm610_vm1 }
 0xe3f   :  { %v606_v29 = vsub.f32 1.0, %v605_v28 }
 0xe40   :  { %v780_v20 = vpop.f32.mrf.mxu1 }
 0xe41   :  { %v781_v21 = vadd.f32 %v1157_v39, %v780_v20  ;;  %v607_v30 = vmul.f32 %v948_v27, %v606_v29 }
 0xe43   :  { %800 = vst [vmem:[%s1242_s6 + $0x10] sm:$0xff] %v781_v21  ;;  %v608_v31 = vadd.f32 %v948_v27, %v607_v30 }
 0xe45   :  { %v612_v34 = vsel %vm611_vm13, %v948_v27, %v608_v31 }
 0xe46   :  { %v617_v37 = vsel %vm614_vm14, %v616_v35, %v612_v34 }
 0xe47   :  { %v620_v40 = vmul.f32 %v617_v37, %v1165_v60 }
 0xe48   :  { %v783_v22 = vpop.f32.mrf.mxu1 }
 0xe49   :  { %v784_v23 = vadd.f32 %v1157_v39, %v783_v22 }
 0xe4b   :  { %801 = vst [vmem:[%s1242_s6 + $0x18] sm:$0xff] %v784_v23 }
 0xea4   :  { %v623_v36 = vpop.permute.xlu1 %622 }
 0xea5   :  { %v625_v38 = vmul.f32 %v623_v36, %v617_v37 }
 0xea7   :  { %627 = vrot.lane.b32.xlu2 %v625_v38, %s960_s21 }
 0xf01   :  { %v628_v41 = vpop.permute.xlu2 %627 }
 0xf02   :  { %v630_v42 = vadd.f32 %v628_v41, %v620_v40 }
 0xf04   :  { %949 = vtanh.f32 %v630_v42 }
 0xf0a   :  { %v950_v43 = vpop.eup %949 }
 0xf0b   :  { %633 = vrot.lane.b32.xlu0 %v950_v43, %s960_s21 }
 0xf7d   :  { %v634_v44 = vpop.permute.xlu0 %633 }
 0xf7e   :  { %v636_v45 = vmul.f32 %v634_v44, %v617_v37 }
 0xf80   :  { %638 = vrot.lane.b32.xlu1 %v636_v45, %s961_s3 }
 0xff2   :  { %v639_v46 = vpop.permute.xlu1 %638 }
 0xff3   :  { %642 = vst.msk [vmem:[#allocation3 + $0x30] sm:$0xff] %vm66_vm0, %v639_v46  ;;  %873 = vmatmul.msk.f32.vlgmr.msra.gmra.mxu2 %vm66_vm0, %v639_v46 }
 0xffa   :  { %v723_v47 = vld [vmem:[#allocation3 + $0x30] sm:$0xff] }
 0xffb   :  { %881 = vmatmul.msk.f32.gmra.mxu3 %vm66_vm0, %v723_v47 }
0x1076   :  { %v664_v49 = vpop.f32.mrf.mxu2 }
0x1077   :  { %v667_v50 = vadd.f32 %v664_v49, %v151_v48 }
0x1079   :  { %951 = vtanh.f32 %v667_v50  ;;  %v874_v54 = vmul.f32 -1.442695, %v667_v50 }
0x107b   :  { %953 = vpow2.f32 %v874_v54 }
0x107e   :  { %v792_v51 = vpop.f32.mrf.mxu3 }
0x107f   :  { %v952_v52 = vpop.eup %951  ;;  %v793_v53 = vadd.f32 %v1157_v39, %v792_v51 }
0x1080   :  { %690 = vrot.lane.b32.xlu2 %v952_v52, %s960_s21 }
0x1081   :  { %804 = vst [vmem:[%s1242_s6 + $0x30] sm:$0xff] %v793_v53  ;;  %v954_v55 = vpop.eup %953 }
0x1082   :  { %v671_v56 = vadd.f32 1.0, %v954_v55 }
0x1084   :  { %955 = vrcp.f32 %v671_v56  ;;  %v683_v60 = vand.u32 2147483648, %v671_v56  ;;  %vm677_vm2 = vweird.f32 %v671_v56  ;;  %v681_v61 = vand.u32 2147483647, %v671_v56 }
0x1086   :  { %v684_v63 = vor.u32 1.1754944e-38, %v683_v60  ;;  %vm682_vm4 = vcmp.eq.f32.partialorder %v681_v61, 8.507059e+37 }
0x108a   :  { %v956_v57 = vpop.eup %955 }
0x108b   :  { %v673_v10 = vmul.f32 %v956_v57, %v671_v56  ;;  %vm678_vm15 = vweird.f32 %v956_v57 }
0x108c   :  { %vm679_vm3 = vmor %vm677_vm2, %vm678_vm15 }
0x108d   :  { %v674_v12 = vsub.f32 1.0, %v673_v10 }
0x108f   :  { %v675_v58 = vmul.f32 %v956_v57, %v674_v12 }
0x1091   :  { %v676_v59 = vadd.f32 %v956_v57, %v675_v58 }
0x1093   :  { %v680_v62 = vsel %vm679_vm3, %v956_v57, %v676_v59 }
0x1094   :  { %v685_v1 = vsel %vm682_vm4, %v684_v63, %v680_v62 }
0x1095   :  { %v688_v3 = vmul.f32 %v685_v1, %v630_v42 }
0x10da   :  { %v691_v0 = vpop.permute.xlu2 %690 }
0x10db   :  { %v693_v2 = vmul.f32 %v691_v0, %v685_v1 }
0x10dd   :  { %695 = vrot.lane.b32.xlu0 %v693_v2, %s960_s21 }
0x114f   :  { %v696_v4 = vpop.permute.xlu0 %695 }
0x1150   :  { %v698_v5 = vadd.f32 %v696_v4, %v688_v3 }
0x1152   :  { %957 = vtanh.f32 %v698_v5  ;;  %712 = vrot.lane.b32.xlu0 %v698_v5, %s962_s10 }
0x1158   :  { %v958_v6 = vpop.eup %957 }
0x1159   :  { %701 = vrot.lane.b32.xlu1 %v958_v6, %s960_s21 }
0x11c4   :  { %v713_v7 = vpop.permute.xlu0 %712 }
0x11c5   :  { %715 = vst.msk [vmem:[#allocation4] sm:$0xff] %vm66_vm0, %v713_v7 }
0x11c6   :  { %809 = vst.msk [vmem:[%s1243_s7] sm:$0xff] %vm66_vm0, %v713_v7 }
0x11cb   :  { %v702_v8 = vpop.permute.xlu1 %701 }
0x11cc   :  { %v704_v9 = vmul.f32 %v702_v8, %v685_v1 }
0x11ce   :  { %706 = vrot.lane.b32.xlu2 %v704_v9, %s961_s3 }
0x1228   :  { %v707_v11 = vpop.permute.xlu2 %706 }
0x1229   :  { %710 = vst.msk [vmem:[#allocation3 + $0x38] sm:$0xff] %vm66_vm0, %v707_v11 }
0x122a   :  { %716 = vst.msk [vmem:[#allocation5] sm:$0xff] %vm66_vm0, %v707_v11 }
0x122b   :  { %810 = vst.msk [vmem:[%s1244_s8] sm:$0xff] %vm66_vm0, %v707_v11 }
0x1230   :  { %v724_v13 = vld [vmem:[#allocation3 + $0x38] sm:$0xff] }
0x1231   :  { %882 = vmatmul.msk.f32.gmra.mxu3 %vm66_vm0, %v724_v13 }
0x12b4   :  { %v795_v14 = vpop.f32.mrf.mxu3 }
0x12b5   :  { %v796_v15 = vadd.f32 %v1157_v39, %v795_v14 }
0x12b7   :  { %805 = vst [vmem:[%s1242_s6 + $0x38] sm:$0xff] %v796_v15 }

</bundles_post_ra>
